<compile_context>
chip_gen: v6e
topology: v6e:2x2x1
jax: 0.10.0
libtpu: 0.0.40
codegen_flags: <defaults>
</compile_context>

<pallas_src>
import math
from functools import partial

import jax
import jax.numpy as jnp
from jax.experimental import pallas as pl
from jax.experimental.pallas import tpu as pltpu


def _mine_kernel(x_ref, z_ref, zm_ref,
                 w1x_ref, w1z_ref, b1_ref,
                 w2_ref, b2_ref, w3r_ref, b3_ref,
                 rm_ref,
                 loss_ref, rm_out_ref,
                 sum_ref, max_ref, den_ref,
                 *, n_total, alpha):
    """One grid step processes a (TN, ·) slice of the batch.

    Inputs:  x (TN,Dx), z / z_marg (TN,Dz), split MLP params, running_mean (1,1)
    Outputs: loss (1,1), new_running_mean (1,1)   [written on the last step]
    Scratch: running sum of t_joint, running max / rescaled sum for the online
             logsumexp of t_marg (all (1,1) f32, persistent across the grid).
    """
    i = pl.program_id(0)
    tn = x_ref.shape[0]

    @pl.when(i == 0)
    def _init():
        sum_ref[...] = jnp.zeros_like(sum_ref)
        max_ref[...] = jnp.full_like(max_ref, -jnp.inf)
        den_ref[...] = jnp.zeros_like(den_ref)

    # ---- layer 1: x @ W1x is shared between joint and marginal batches ------
    xw = jnp.dot(x_ref[...], w1x_ref[...], preferred_element_type=jnp.float32)
    zj = jnp.dot(z_ref[...], w1z_ref[...], preferred_element_type=jnp.float32)
    zm = jnp.dot(zm_ref[...], w1z_ref[...], preferred_element_type=jnp.float32)
    h1 = jnp.maximum(
        jnp.concatenate([xw + zj, xw + zm], axis=0) + b1_ref[...], 0.0)  # (2TN,H)

    # ---- layer 2: one fused matmul over the stacked (joint | marginal) batch
    h2 = jnp.maximum(
        jnp.dot(h1, w2_ref[...], preferred_element_type=jnp.float32) + b2_ref[...],
        0.0)                                                             # (2TN,H)

    # ---- layer 3: out-dim-1 projection as VPU multiply + lane reduce --------
    t = jnp.sum(h2 * w3r_ref[...], axis=-1, keepdims=True) + b3_ref[...]  # (2TN,1)
    t_joint = t[:tn]
    t_marg = t[tn:]

    # streaming mean of T(x, z)
    sum_ref[...] = sum_ref[...] + jnp.sum(t_joint, keepdims=True)

    # online (stable) logsumexp of T(x, z_marg)
    m_old = max_ref[...]
    m_new = jnp.maximum(m_old, jnp.max(t_marg, keepdims=True))
    den_ref[...] = (den_ref[...] * jnp.exp(m_old - m_new)
                    + jnp.sum(jnp.exp(t_marg - m_new), keepdims=True))
    max_ref[...] = m_new

    @pl.when(i == pl.num_programs(0) - 1)
    def _finalize():
        t_mean = sum_ref[...] * (1.0 / float(n_total))
        t_log = max_ref[...] + jnp.log(den_ref[...]) - math.log(float(n_total))
        t_exp = jnp.exp(t_log)                      # = mean(exp(t_marg))
        loss_ref[...] = -t_mean + t_log
        rm = rm_ref[...]
        # EMA fused in-kernel: rm==0 -> take t_exp, else alpha*t_exp+(1-a)*rm
        rm_out_ref[...] = jnp.where(rm == 0.0, t_exp,
                                    alpha * t_exp + (1.0 - alpha) * rm)


def _pick_tile(n):
    """Largest batch tile (multiple of 8, <= 1024) dividing n; else full batch."""
    if n <= 1024:
        return n
    for t in (1024, 512, 256, 128, 64, 32, 16, 8):
        if n % t == 0:
            return t
    # TODO(synk): pad + mask ragged batch sizes instead of one full-batch block.
    return n


@partial(jax.jit, static_argnames=("alpha", "tile_rows"))
def mine_forward(x, z, z_marg, params, running_mean, alpha=0.01, tile_rows=None):
    """Equivalent of Mine.forward(x, z, z_marg) with loss='mine'.

    Returns (loss, new_running_mean)."""
    w1x, w1z, b1, w2, b2, w3_row, b3 = params
    x = x.astype(jnp.float32)
    z = z.astype(jnp.float32)
    z_marg = z_marg.astype(jnp.float32)
    rm = jnp.asarray(running_mean, jnp.float32).reshape(1, 1)

    n, dx = x.shape
    dz = z.shape[1]
    h = w2.shape[0]

    tn = tile_rows if (tile_rows is not None and n % tile_rows == 0
                       and (tile_rows % 8 == 0 or tile_rows == n)) else _pick_tile(n)
    grid = (n // tn,)

    kernel = partial(_mine_kernel, n_total=n, alpha=float(alpha))

    # Advisory cost estimate for XLA's scheduler.
    flops = (2 * n * dx * h          # x @ W1x (shared)
             + 4 * n * dz * h        # z @ W1z and z_marg @ W1z
             + 2 * (2 * n) * h * h   # layer 2 on the stacked batch
             + 4 * n * h)            # layer-3 multiply + reduce
    bytes_accessed = 4 * (n * (dx + 2 * dz) + dx * h + dz * h + h * h + 3 * h + 4)
    cost = pl.CostEstimate(flops=flops, transcendentals=n + 3,
                           bytes_accessed=bytes_accessed)

    loss, new_rm = pl.pallas_call(
        kernel,
        grid=grid,
        in_specs=[
            pl.BlockSpec((tn, dx), lambda i: (i, 0)),   # x         (streamed)
            pl.BlockSpec((tn, dz), lambda i: (i, 0)),   # z         (streamed)
            pl.BlockSpec((tn, dz), lambda i: (i, 0)),   # z_marg    (streamed)
            pl.BlockSpec((dx, h), lambda i: (0, 0)),    # W1x
            pl.BlockSpec((dz, h), lambda i: (0, 0)),    # W1z
            pl.BlockSpec((1, h), lambda i: (0, 0)),     # b1
            pl.BlockSpec((h, h), lambda i: (0, 0)),     # W2
            pl.BlockSpec((1, h), lambda i: (0, 0)),     # b2
            pl.BlockSpec((1, h), lambda i: (0, 0)),     # w3 (row form)
            pl.BlockSpec((1, 1), lambda i: (0, 0)),     # b3
            pl.BlockSpec((1, 1), lambda i: (0, 0)),     # running_mean
        ],
        out_specs=(
            pl.BlockSpec((1, 1), lambda i: (0, 0)),     # loss
            pl.BlockSpec((1, 1), lambda i: (0, 0)),     # new running mean
        ),
        out_shape=(
            jax.ShapeDtypeStruct((1, 1), jnp.float32),
            jax.ShapeDtypeStruct((1, 1), jnp.float32),
        ),
        scratch_shapes=[
            pltpu.VMEM((1, 1), jnp.float32),   # running sum of t_joint
            pltpu.VMEM((1, 1), jnp.float32),   # running max of t_marg
            pltpu.VMEM((1, 1), jnp.float32),   # rescaled running sum of exp
        ],
        compiler_params=pltpu.CompilerParams(
            dimension_semantics=("arbitrary",)),   # accumulators -> sequential axis
        cost_estimate=cost,
    )(x, z, z_marg, w1x, w1z, b1, w2, b2, w3_row, b3, rm)

    return loss[0, 0], new_rm[0, 0]


def init_params(key, x_dim, z_dim, hidden):
    """MLP params, stored pre-split: (W1x, W1z, b1, W2, b2, w3_row, b3)."""
    d = x_dim + z_dim
    k1, k2, k3 = jax.random.split(key, 3)
    w1 = jax.random.normal(k1, (d, hidden), jnp.float32) / math.sqrt(d)
    w1x, w1z = w1[:x_dim], w1[x_dim:]
    b1 = jnp.zeros((1, hidden), jnp.float32)
    w2 = jax.random.normal(k2, (hidden, hidden), jnp.float32) / math.sqrt(hidden)
    b2 = jnp.zeros((1, hidden), jnp.float32)
    w3_row = jax.random.normal(k3, (1, hidden), jnp.float32) / math.sqrt(hidden)
    b3 = jnp.zeros((1, 1), jnp.float32)
    return (w1x, w1z, b1, w2, b2, w3_row, b3)


def reference_forward(x, z, z_marg, params, running_mean, alpha=0.01):
    """Pure-JAX reference for correctness checking."""
    w1x, w1z, b1, w2, b2, w3_row, b3 = params
    w1 = jnp.concatenate([w1x, w1z], axis=0)
    w3 = w3_row.T

    def mlp(a):
        h = jax.nn.relu(a @ w1 + b1)
        h = jax.nn.relu(h @ w2 + b2)
        return h @ w3 + b3

    xj = jnp.concatenate([x, z], axis=-1)
    xm = jnp.concatenate([x, z_marg], axis=-1)
    t = jnp.mean(mlp(xj))
    t_marg = mlp(xm)
    n = t_marg.shape[0]
    t_log = jax.scipy.special.logsumexp(t_marg) - math.log(n)
    t_exp = jnp.exp(t_log)
    new_rm = jnp.where(running_mean == 0.0, t_exp,
                       alpha * t_exp + (1.0 - alpha) * running_mean)
    return -t + t_log, new_rm


if __name__ == "__main__":
    key = jax.random.PRNGKey(0)
    kx, kz, kperm, kparam, kx2, kz2, kperm2 = jax.random.split(key, 7)

    N, X_DIM, Z_DIM, HIDDEN = 8, 4, 4, 32

    x = jax.random.normal(kx, (N, X_DIM), jnp.float32)
    z = jax.random.normal(kz, (N, Z_DIM), jnp.float32)
    # z_marg = z[randperm(N)] -- the permutation is done in glue code, like the
    # PyTorch module does with torch.randperm before calling T.
    z_marg = z[jax.random.permutation(kperm, N)]

    params = init_params(kparam, X_DIM, Z_DIM, HIDDEN)
    running_mean = jnp.float32(0.0)

    # ---- test 1: single-tile path, running_mean == 0 branch ----
    loss, new_rm = mine_forward(x, z, z_marg, params, running_mean, alpha=0.01)
    jax.block_until_ready((loss, new_rm))
    ref_loss, ref_rm = reference_forward(x, z, z_marg, params, running_mean, 0.01)
    assert jnp.allclose(loss, ref_loss, atol=1e-5, rtol=1e-5), (loss, ref_loss)
    assert jnp.allclose(new_rm, ref_rm, atol=1e-5, rtol=1e-5), (new_rm, ref_rm)

    # ---- test 2: multi-tile streaming path (grid of 4), EMA branch ----
    N2 = 32
    x2 = jax.random.normal(kx2, (N2, X_DIM), jnp.float32)
    z2 = jax.random.normal(kz2, (N2, Z_DIM), jnp.float32)
    z2_marg = z2[jax.random.permutation(kperm2, N2)]

    loss2, rm2 = mine_forward(x2, z2, z2_marg, params, new_rm, alpha=0.01,
                              tile_rows=8)
    jax.block_until_ready((loss2, rm2))
    ref_loss2, ref_rm2 = reference_forward(x2, z2, z2_marg, params, ref_rm, 0.01)
    assert jnp.allclose(loss2, ref_loss2, atol=1e-5, rtol=1e-5), (loss2, ref_loss2)
    assert jnp.allclose(rm2, ref_rm2, atol=1e-5, rtol=1e-5), (rm2, ref_rm2)

    print("KERNEL_OK")
</pallas_src>

<mosaic_0001>
module attributes {stable_mosaic.version = 11 : i64} {
  func.func @_mine_kernel(%arg0: i32, %arg1: memref<8x4xf32, #tpu.memory_space<vmem>>, %arg2: memref<8x4xf32, #tpu.memory_space<vmem>>, %arg3: memref<8x4xf32, #tpu.memory_space<vmem>>, %arg4: memref<4x32xf32, #tpu.memory_space<vmem>>, %arg5: memref<4x32xf32, #tpu.memory_space<vmem>>, %arg6: memref<1x32xf32, #tpu.memory_space<vmem>>, %arg7: memref<32x32xf32, #tpu.memory_space<vmem>>, %arg8: memref<1x32xf32, #tpu.memory_space<vmem>>, %arg9: memref<1x32xf32, #tpu.memory_space<vmem>>, %arg10: memref<1x1xf32, #tpu.memory_space<vmem>>, %arg11: memref<1x1xf32, #tpu.memory_space<vmem>>, %arg12: memref<1x1xf32, #tpu.memory_space<vmem>>, %arg13: memref<1x1xf32, #tpu.memory_space<vmem>>, %arg14: memref<1x1xf32, #tpu.memory_space<vmem>>, %arg15: memref<1x1xf32, #tpu.memory_space<vmem>>, %arg16: memref<1x1xf32, #tpu.memory_space<vmem>>) attributes {dimension_semantics = [#tpu.dimension_semantics<arbitrary>], iteration_bounds = array<i64: 1>, scalar_prefetch = 0 : i64, scratch_operands = 3 : i64, tpu.core_type = #tpu.core_type<tc>, window_params = [{transform_indices = @transform_0, window_bounds = array<i64: 8, 4>}, {transform_indices = @transform_1, window_bounds = array<i64: 8, 4>}, {transform_indices = @transform_2, window_bounds = array<i64: 8, 4>}, {pipeline_mode = #tpu.pipeline_mode<synchronous>, transform_indices = @transform_3, window_bounds = array<i64: 4, 32>}, {pipeline_mode = #tpu.pipeline_mode<synchronous>, transform_indices = @transform_4, window_bounds = array<i64: 4, 32>}, {pipeline_mode = #tpu.pipeline_mode<synchronous>, transform_indices = @transform_5, window_bounds = array<i64: 1, 32>}, {pipeline_mode = #tpu.pipeline_mode<synchronous>, transform_indices = @transform_6, window_bounds = array<i64: 32, 32>}, {pipeline_mode = #tpu.pipeline_mode<synchronous>, transform_indices = @transform_7, window_bounds = array<i64: 1, 32>}, {pipeline_mode = #tpu.pipeline_mode<synchronous>, transform_indices = @transform_8, window_bounds = array<i64: 1, 32>}, {pipeline_mode = #tpu.pipeline_mode<synchronous>, transform_indices = @transform_9, window_bounds = array<i64: 1, 1>}, {pipeline_mode = #tpu.pipeline_mode<synchronous>, transform_indices = @transform_10, window_bounds = array<i64: 1, 1>}, {pipeline_mode = #tpu.pipeline_mode<synchronous>, transform_indices = @transform_11, window_bounds = array<i64: 1, 1>}, {pipeline_mode = #tpu.pipeline_mode<synchronous>, transform_indices = @transform_12, window_bounds = array<i64: 1, 1>}]} {
    %c0_i32 = arith.constant 0 : i32
    %0 = arith.cmpi eq, %arg0, %c0_i32 : i32
    %1 = arith.extui %0 : i1 to i32
    %c0_i32_0 = arith.constant 0 : i32
    %2 = arith.cmpi ne, %1, %c0_i32_0 : i32
    scf.if %2 {
      %cst_45 = arith.constant 0.000000e+00 : f32
      %70 = vector.broadcast %cst_45 : f32 to vector<1x1xf32>
      %c0_46 = arith.constant 0 : index
      %c0_47 = arith.constant 0 : index
      %71 = vector.load %arg14[%c0_46, %c0_47] : memref<1x1xf32, #tpu.memory_space<vmem>>, vector<1x1xf32>
      tpu.vector_store %arg14[%c0_46, %c0_47], %70 {strides = array<i32>} : memref<1x1xf32, #tpu.memory_space<vmem>>, vector<1x1xf32>,
      %cst_48 = arith.constant 0xFF800000 : f32
      %72 = vector.broadcast %cst_48 : f32 to vector<1x1xf32>
      %c0_49 = arith.constant 0 : index
      %c0_50 = arith.constant 0 : index
      %73 = vector.load %arg15[%c0_49, %c0_50] : memref<1x1xf32, #tpu.memory_space<vmem>>, vector<1x1xf32>
      tpu.vector_store %arg15[%c0_49, %c0_50], %72 {strides = array<i32>} : memref<1x1xf32, #tpu.memory_space<vmem>>, vector<1x1xf32>,
      %cst_51 = arith.constant 0.000000e+00 : f32
      %74 = vector.broadcast %cst_51 : f32 to vector<1x1xf32>
      %c0_52 = arith.constant 0 : index
      %c0_53 = arith.constant 0 : index
      %75 = vector.load %arg16[%c0_52, %c0_53] : memref<1x1xf32, #tpu.memory_space<vmem>>, vector<1x1xf32>
      tpu.vector_store %arg16[%c0_52, %c0_53], %74 {strides = array<i32>} : memref<1x1xf32, #tpu.memory_space<vmem>>, vector<1x1xf32>,
    } else {
    }
    %c0 = arith.constant 0 : index
    %c0_1 = arith.constant 0 : index
    %3 = vector.load %arg1[%c0, %c0_1] : memref<8x4xf32, #tpu.memory_space<vmem>>, vector<8x4xf32>
    %c0_2 = arith.constant 0 : index
    %c0_3 = arith.constant 0 : index
    %4 = vector.load %arg4[%c0_2, %c0_3] : memref<4x32xf32, #tpu.memory_space<vmem>>, vector<4x32xf32>
    %cst = arith.constant dense<0.000000e+00> : vector<8x32xf32>
    %5 = tpu.matmul %3, %4, %cst {dimension_numbers = #tpu.dot_dimension_numbers<[1], [0], [0], [1], [0, 0, 1, 1], [], []>} : vector<8x4xf32>, vector<4x32xf32>, vector<8x32xf32> -> vector<8x32xf32>
    %c0_4 = arith.constant 0 : index
    %c0_5 = arith.constant 0 : index
    %6 = vector.load %arg2[%c0_4, %c0_5] : memref<8x4xf32, #tpu.memory_space<vmem>>, vector<8x4xf32>
    %c0_6 = arith.constant 0 : index
    %c0_7 = arith.constant 0 : index
    %7 = vector.load %arg5[%c0_6, %c0_7] : memref<4x32xf32, #tpu.memory_space<vmem>>, vector<4x32xf32>
    %cst_8 = arith.constant dense<0.000000e+00> : vector<8x32xf32>
    %8 = tpu.matmul %6, %7, %cst_8 {dimension_numbers = #tpu.dot_dimension_numbers<[1], [0], [0], [1], [0, 0, 1, 1], [], []>} : vector<8x4xf32>, vector<4x32xf32>, vector<8x32xf32> -> vector<8x32xf32>
    %c0_9 = arith.constant 0 : index
    %c0_10 = arith.constant 0 : index
    %9 = vector.load %arg3[%c0_9, %c0_10] : memref<8x4xf32, #tpu.memory_space<vmem>>, vector<8x4xf32>
    %c0_11 = arith.constant 0 : index
    %c0_12 = arith.constant 0 : index
    %10 = vector.load %arg5[%c0_11, %c0_12] : memref<4x32xf32, #tpu.memory_space<vmem>>, vector<4x32xf32>
    %cst_13 = arith.constant dense<0.000000e+00> : vector<8x32xf32>
    %11 = tpu.matmul %9, %10, %cst_13 {dimension_numbers = #tpu.dot_dimension_numbers<[1], [0], [0], [1], [0, 0, 1, 1], [], []>} : vector<8x4xf32>, vector<4x32xf32>, vector<8x32xf32> -> vector<8x32xf32>
    %12 = arith.addf %5, %8 : vector<8x32xf32>
    %13 = arith.addf %5, %11 : vector<8x32xf32>
    %14 = tpu.concatenate %12, %13 in 0 : vector<8x32xf32>, vector<8x32xf32> -> vector<16x32xf32>
    %c0_14 = arith.constant 0 : index
    %c0_15 = arith.constant 0 : index
    %15 = vector.load %arg6[%c0_14, %c0_15] : memref<1x32xf32, #tpu.memory_space<vmem>>, vector<1x32xf32>
    %16 = vector.broadcast %15 : vector<1x32xf32> to vector<16x32xf32>
    %17 = arith.addf %14, %16 : vector<16x32xf32>
    %cst_16 = arith.constant 0.000000e+00 : f32
    %18 = vector.broadcast %cst_16 : f32 to vector<16x32xf32>
    %19 = arith.maximumf %17, %18 : vector<16x32xf32>
    %c0_17 = arith.constant 0 : index
    %c0_18 = arith.constant 0 : index
    %20 = vector.load %arg7[%c0_17, %c0_18] : memref<32x32xf32, #tpu.memory_space<vmem>>, vector<32x32xf32>
    %cst_19 = arith.constant dense<0.000000e+00> : vector<16x32xf32>
    %21 = tpu.matmul %19, %20, %cst_19 {dimension_numbers = #tpu.dot_dimension_numbers<[1], [0], [0], [1], [0, 0, 1, 1], [], []>} : vector<16x32xf32>, vector<32x32xf32>, vector<16x32xf32> -> vector<16x32xf32>
    %c0_20 = arith.constant 0 : index
    %c0_21 = arith.constant 0 : index
    %22 = vector.load %arg8[%c0_20, %c0_21] : memref<1x32xf32, #tpu.memory_space<vmem>>, vector<1x32xf32>
    %23 = vector.broadcast %22 : vector<1x32xf32> to vector<16x32xf32>
    %24 = arith.addf %21, %23 : vector<16x32xf32>
    %cst_22 = arith.constant 0.000000e+00 : f32
    %25 = vector.broadcast %cst_22 : f32 to vector<16x32xf32>
    %26 = arith.maximumf %24, %25 : vector<16x32xf32>
    %c0_23 = arith.constant 0 : index
    %c0_24 = arith.constant 0 : index
    %27 = vector.load %arg9[%c0_23, %c0_24] : memref<1x32xf32, #tpu.memory_space<vmem>>, vector<1x32xf32>
    %28 = vector.broadcast %27 : vector<1x32xf32> to vector<16x32xf32>
    %29 = arith.mulf %26, %28 : vector<16x32xf32>
    %cst_25 = arith.constant dense<0.000000e+00> : vector<16xf32>
    %30 = vector.multi_reduction <add>, %29, %cst_25 [1] : vector<16x32xf32> to vector<16xf32>
    %31 = vector.shape_cast %30 : vector<16xf32> to vector<16x1xf32>
    %c0_26 = arith.constant 0 : index
    %c0_27 = arith.constant 0 : index
    %32 = vector.load %arg10[%c0_26, %c0_27] : memref<1x1xf32, #tpu.memory_space<vmem>>, vector<1x1xf32>
    %33 = vector.broadcast %32 : vector<1x1xf32> to vector<16x1xf32>
    %34 = arith.addf %31, %33 : vector<16x1xf32>
    %35 = vector.extract_strided_slice %34 {offsets = [0, 0], sizes = [8, 1], strides = [1, 1]} : vector<16x1xf32> to vector<8x1xf32>
    %36 = vector.extract_strided_slice %34 {offsets = [8, 0], sizes = [8, 1], strides = [1, 1]} : vector<16x1xf32> to vector<8x1xf32>
    %c0_28 = arith.constant 0 : index
    %c0_29 = arith.constant 0 : index
    %37 = vector.load %arg14[%c0_28, %c0_29] : memref<1x1xf32, #tpu.memory_space<vmem>>, vector<1x1xf32>
    %38 = vector.shape_cast %35 : vector<8x1xf32> to vector<1x8x1xf32>
    %cst_30 = arith.constant dense<0.000000e+00> : vector<1xf32>
    %39 = vector.multi_reduction <add>, %38, %cst_30 [1, 2] : vector<1x8x1xf32> to vector<1xf32>
    %40 = vector.shape_cast %39 : vector<1xf32> to vector<1x1x1xf32>
    %41 = vector.extract %40[0, 0, 0] : f32 from vector<1x1x1xf32>
    %42 = vector.broadcast %41 : f32 to vector<1x1xf32>
    %43 = arith.addf %37, %42 : vector<1x1xf32>
    %c0_31 = arith.constant 0 : index
    %c0_32 = arith.constant 0 : index
    %44 = vector.load %arg14[%c0_31, %c0_32] : memref<1x1xf32, #tpu.memory_space<vmem>>, vector<1x1xf32>
    tpu.vector_store %arg14[%c0_31, %c0_32], %43 {strides = array<i32>} : memref<1x1xf32, #tpu.memory_space<vmem>>, vector<1x1xf32>,
    %c0_33 = arith.constant 0 : index
    %c0_34 = arith.constant 0 : index
    %45 = vector.load %arg15[%c0_33, %c0_34] : memref<1x1xf32, #tpu.memory_space<vmem>>, vector<1x1xf32>
    %46 = vector.shape_cast %36 : vector<8x1xf32> to vector<1x8x1xf32>
    %cst_35 = arith.constant dense<0xFF800000> : vector<1xf32>
    %47 = vector.multi_reduction <maximumf>, %46, %cst_35 [1, 2] : vector<1x8x1xf32> to vector<1xf32>
    %48 = vector.shape_cast %47 : vector<1xf32> to vector<1x1x1xf32>
    %49 = vector.extract %48[0, 0, 0] : f32 from vector<1x1x1xf32>
    %50 = vector.broadcast %49 : f32 to vector<1x1xf32>
    %51 = arith.maximumf %45, %50 : vector<1x1xf32>
    %c0_36 = arith.constant 0 : index
    %c0_37 = arith.constant 0 : index
    %52 = vector.load %arg16[%c0_36, %c0_37] : memref<1x1xf32, #tpu.memory_space<vmem>>, vector<1x1xf32>
    %53 = arith.subf %45, %51 : vector<1x1xf32>
    %54 = math.exp %53 : vector<1x1xf32>
    %55 = arith.mulf %52, %54 : vector<1x1xf32>
    %56 = vector.broadcast %51 : vector<1x1xf32> to vector<8x1xf32>
    %57 = arith.subf %36, %56 : vector<8x1xf32>
    %58 = math.exp %57 : vector<8x1xf32>
    %59 = vector.shape_cast %58 : vector<8x1xf32> to vector<1x8x1xf32>
    %cst_38 = arith.constant dense<0.000000e+00> : vector<1xf32>
    %60 = vector.multi_reduction <add>, %59, %cst_38 [1, 2] : vector<1x8x1xf32> to vector<1xf32>
    %61 = vector.shape_cast %60 : vector<1xf32> to vector<1x1x1xf32>
    %62 = vector.extract %61[0, 0, 0] : f32 from vector<1x1x1xf32>
    %63 = vector.broadcast %62 : f32 to vector<1x1xf32>
    %64 = arith.addf %55, %63 : vector<1x1xf32>
    %c0_39 = arith.constant 0 : index
    %c0_40 = arith.constant 0 : index
    %65 = vector.load %arg16[%c0_39, %c0_40] : memref<1x1xf32, #tpu.memory_space<vmem>>, vector<1x1xf32>
    tpu.vector_store %arg16[%c0_39, %c0_40], %64 {strides = array<i32>} : memref<1x1xf32, #tpu.memory_space<vmem>>, vector<1x1xf32>,
    %c0_41 = arith.constant 0 : index
    %c0_42 = arith.constant 0 : index
    %66 = vector.load %arg15[%c0_41, %c0_42] : memref<1x1xf32, #tpu.memory_space<vmem>>, vector<1x1xf32>
    tpu.vector_store %arg15[%c0_41, %c0_42], %51 {strides = array<i32>} : memref<1x1xf32, #tpu.memory_space<vmem>>, vector<1x1xf32>,
    %c0_i32_43 = arith.constant 0 : i32
    %67 = arith.cmpi eq, %arg0, %c0_i32_43 : i32
    %68 = arith.extui %67 : i1 to i32
    %c0_i32_44 = arith.constant 0 : i32
    %69 = arith.cmpi ne, %68, %c0_i32_44 : i32
    scf.if %69 {
      %c0_45 = arith.constant 0 : index
      %c0_46 = arith.constant 0 : index
      %70 = vector.load %arg14[%c0_45, %c0_46] : memref<1x1xf32, #tpu.memory_space<vmem>>, vector<1x1xf32>
      %cst_47 = arith.constant 1.250000e-01 : f32
      %71 = vector.broadcast %cst_47 : f32 to vector<1x1xf32>
      %72 = arith.mulf %70, %71 : vector<1x1xf32>
      %c0_48 = arith.constant 0 : index
      %c0_49 = arith.constant 0 : index
      %73 = vector.load %arg15[%c0_48, %c0_49] : memref<1x1xf32, #tpu.memory_space<vmem>>, vector<1x1xf32>
      %c0_50 = arith.constant 0 : index
      %c0_51 = arith.constant 0 : index
      %74 = vector.load %arg16[%c0_50, %c0_51] : memref<1x1xf32, #tpu.memory_space<vmem>>, vector<1x1xf32>
      %75 = math.log %74 : vector<1x1xf32>
      %76 = arith.addf %73, %75 : vector<1x1xf32>
      %cst_52 = arith.constant 2.07944155 : f32
      %77 = vector.broadcast %cst_52 : f32 to vector<1x1xf32>
      %78 = arith.subf %76, %77 : vector<1x1xf32>
      %79 = math.exp %78 : vector<1x1xf32>
      %cst_53 = arith.constant 0.000000e+00 : f32
      %80 = vector.broadcast %cst_53 : f32 to vector<1x1xf32>
      %81 = arith.subf %80, %72 : vector<1x1xf32>
      %82 = arith.addf %81, %78 : vector<1x1xf32>
      %c0_54 = arith.constant 0 : index
      %c0_55 = arith.constant 0 : index
      %83 = vector.load %arg12[%c0_54, %c0_55] : memref<1x1xf32, #tpu.memory_space<vmem>>, vector<1x1xf32>
      tpu.vector_store %arg12[%c0_54, %c0_55], %82 {strides = array<i32>} : memref<1x1xf32, #tpu.memory_space<vmem>>, vector<1x1xf32>,
      %c0_56 = arith.constant 0 : index
      %c0_57 = arith.constant 0 : index
      %84 = vector.load %arg11[%c0_56, %c0_57] : memref<1x1xf32, #tpu.memory_space<vmem>>, vector<1x1xf32>
      %cst_58 = arith.constant 0.000000e+00 : f32
      %85 = vector.broadcast %cst_58 : f32 to vector<1x1xf32>
      %86 = arith.cmpf oeq, %84, %85 : vector<1x1xf32>
      %cst_59 = arith.constant 0.00999999977 : f32
      %87 = vector.broadcast %cst_59 : f32 to vector<1x1xf32>
      %88 = arith.mulf %87, %79 : vector<1x1xf32>
      %cst_60 = arith.constant 9.900000e-01 : f32
      %89 = vector.broadcast %cst_60 : f32 to vector<1x1xf32>
      %90 = arith.mulf %89, %84 : vector<1x1xf32>
      %91 = arith.addf %88, %90 : vector<1x1xf32>
      %92 = arith.select %86, %79, %91 : vector<1x1xi1>, vector<1x1xf32>
      %c0_61 = arith.constant 0 : index
      %c0_62 = arith.constant 0 : index
      %93 = vector.load %arg13[%c0_61, %c0_62] : memref<1x1xf32, #tpu.memory_space<vmem>>, vector<1x1xf32>
      tpu.vector_store %arg13[%c0_61, %c0_62], %92 {strides = array<i32>} : memref<1x1xf32, #tpu.memory_space<vmem>>, vector<1x1xf32>,
    } else {
    }
    return
  }
  func.func @transform_0(%arg0: i32) -> (i32, i32) {
    %c0_i32 = arith.constant 0 : i32
    %c0_i32_0 = arith.constant 0 : i32
    return %arg0, %c0_i32 : i32, i32
  }
  func.func @transform_1(%arg0: i32) -> (i32, i32) {
    %c0_i32 = arith.constant 0 : i32
    %c0_i32_0 = arith.constant 0 : i32
    return %arg0, %c0_i32 : i32, i32
  }
  func.func @transform_2(%arg0: i32) -> (i32, i32) {
    %c0_i32 = arith.constant 0 : i32
    %c0_i32_0 = arith.constant 0 : i32
    return %arg0, %c0_i32 : i32, i32
  }
  func.func @transform_3(%arg0: i32) -> (i32, i32) {
    %c0_i32 = arith.constant 0 : i32
    %c0_i32_0 = arith.constant 0 : i32
    %c0_i32_1 = arith.constant 0 : i32
    return %c0_i32, %c0_i32_0 : i32, i32
  }
  func.func @transform_4(%arg0: i32) -> (i32, i32) {
    %c0_i32 = arith.constant 0 : i32
    %c0_i32_0 = arith.constant 0 : i32
    %c0_i32_1 = arith.constant 0 : i32
    return %c0_i32, %c0_i32_0 : i32, i32
  }
  func.func @transform_5(%arg0: i32) -> (i32, i32) {
    %c0_i32 = arith.constant 0 : i32
    %c0_i32_0 = arith.constant 0 : i32
    %c0_i32_1 = arith.constant 0 : i32
    return %c0_i32, %c0_i32_0 : i32, i32
  }
  func.func @transform_6(%arg0: i32) -> (i32, i32) {
    %c0_i32 = arith.constant 0 : i32
    %c0_i32_0 = arith.constant 0 : i32
    %c0_i32_1 = arith.constant 0 : i32
    return %c0_i32, %c0_i32_0 : i32, i32
  }
  func.func @transform_7(%arg0: i32) -> (i32, i32) {
    %c0_i32 = arith.constant 0 : i32
    %c0_i32_0 = arith.constant 0 : i32
    %c0_i32_1 = arith.constant 0 : i32
    return %c0_i32, %c0_i32_0 : i32, i32
  }
  func.func @transform_8(%arg0: i32) -> (i32, i32) {
    %c0_i32 = arith.constant 0 : i32
    %c0_i32_0 = arith.constant 0 : i32
    %c0_i32_1 = arith.constant 0 : i32
    return %c0_i32, %c0_i32_0 : i32, i32
  }
  func.func @transform_9(%arg0: i32) -> (i32, i32) {
    %c0_i32 = arith.constant 0 : i32
    %c0_i32_0 = arith.constant 0 : i32
    %c0_i32_1 = arith.constant 0 : i32
    return %c0_i32, %c0_i32_0 : i32, i32
  }
  func.func @transform_10(%arg0: i32) -> (i32, i32) {
    %c0_i32 = arith.constant 0 : i32
    %c0_i32_0 = arith.constant 0 : i32
    %c0_i32_1 = arith.constant 0 : i32
    return %c0_i32, %c0_i32_0 : i32, i32
  }
  func.func @transform_11(%arg0: i32) -> (i32, i32) {
    %c0_i32 = arith.constant 0 : i32
    %c0_i32_0 = arith.constant 0 : i32
    %c0_i32_1 = arith.constant 0 : i32
    return %c0_i32, %c0_i32_0 : i32, i32
  }
  func.func @transform_12(%arg0: i32) -> (i32, i32) {
    %c0_i32 = arith.constant 0 : i32
    %c0_i32_0 = arith.constant 0 : i32
    %c0_i32_1 = arith.constant 0 : i32
    return %c0_i32, %c0_i32_0 : i32, i32
  }
}

</mosaic_0001>

<bundles_post_ra>
// kernel: mine_forward.1
= control target key start
LH: loop header
LB: loop body
LE: loop exit
PB: predicated region body
PF: predicated region fallthrough
CT: control target
= control target key end

     0   :  { %s784_s0 = inlined_call_operand.vmem [shape: f32[8,4], index: 0, kind: input, shape index: {}]   ;;  %s785_s1 = inlined_call_operand.vmem [shape: f32[8,4], index: 1, kind: input, shape index: {}]   ;;  %s786_s2 = inlined_call_operand.vmem [shape: f32[8,4], index: 2, kind: input, shape index: {}]   ;;  %s787_s3 = inlined_call_operand.vmem [shape: f32[4,32], index: 3, kind: input, shape index: {}]   ;;  %s788_s4 = inlined_call_operand.vmem [shape: f32[4,32], index: 4, kind: input, shape index: {}]   ;;  %s789_s5 = inlined_call_operand.vmem [shape: f32[1,32], index: 5, kind: input, shape index: {}]   ;;  %s790_s6 = inlined_call_operand.vmem [shape: f32[32,32], index: 6, kind: input, shape index: {}]   ;;  %s791_s7 = inlined_call_operand.vmem [shape: f32[1,32], index: 7, kind: input, shape index: {}]   ;;  %s792_s8 = inlined_call_operand.vmem [shape: f32[1,32], index: 8, kind: input, shape index: {}]   ;;  %s793_s9 = inlined_call_operand.<no memory space> [shape: f32[1,1], index: 9, kind: input, shape index: {}]   ;;  %s794_s11 = inlined_call_operand.hbm [shape: f32[1,1], index: 11, kind: output, shape index: {0}]   ;;  %s795_s12 = inlined_call_operand.hbm [shape: f32[1,1], index: 12, kind: output, shape index: {1}]   ;;  %s796_s10 = inlined_call_operand.<no memory space> [shape: f32[1,1], index: 10, kind: input, shape index: {}]  }
   0x1   :  { %v18_v0 = vstv %s793_s9  ;;  %v20_v1 = vstv %s796_s10 }
   0x2   :  { %19 = vst [vmem:[#allocation5] sm:$0x1] %v18_v0  ;;  %21 = vst [vmem:[#allocation6] sm:$0x1] %v20_v1 }
   0x3   :  { %22 = vsyncpa [#allocation8], 0  ;;  %v55_v2 = vld [vmem:[%s787_s3] sm:$0xf]  ;;  %vm60_vm0 = vcmask 1043456   ;;  %v640_v4 = vmov 0.0  }
   0x4   :  { %v54_v3 = vld [vmem:[%s784_s0] sm:$0xff]  ;;  %551 = vmatprep.subr.mxu0 %v640_v4  ;;  %vm641_vm1 = vmmov 0   ;;  %vm56_vm2 = vcmask 31744   ;;  %556 = vmatprep.subr.mxu1 %v640_v4 }
   0x5   :  { %553 = vmatprep.mubr.msk.f32.mxu0 %vm641_vm1, %v640_v4  ;;  %v135_v5 = vld [vmem:[%s788_s4] sm:$0xf]  ;;  %552 = vmatpush3.msk.msra.mxu0 %vm60_vm0, %v55_v2 }
   0x6   :  { %v134_v6 = vld [vmem:[%s785_s1] sm:$0xff] }
   0x7   :  { %23 = vsyncpa [#allocation10], 0  ;;  %554 = vmatmul.mubr.msk.f32.vlgmr.msra.gmra.mxu0 %vm56_vm2, %v54_v3  ;;  %557 = vmatpush3.msk.msra.mxu1 %vm60_vm0, %v135_v5  ;;  %v212_v7 = vld [vmem:[%s786_s2] sm:$0xff]  ;;  %v302_v8 = vld [vmem:[%s790_s6 + $0x18] sm:$0xff]  ;;  %vm310_vm3 = vcmask 261120   ;;  %vm419_vm4 = vcmask 7168   ;;  %v453_v59 = vlaneseq }
   0x8   :  { %558 = vmatprep.mubr.msk.f32.mxu1 %vm641_vm1, %v640_v4  ;;  %561 = vmatprep.subr.mxu0 %v640_v4  ;;  %v301_v9 = vld [vmem:[%s790_s6 + $0x10] sm:$0xff]  ;;  %v300_v10 = vld [vmem:[%s790_s6 + $0x8] sm:$0xff]  ;;  %v299_v11 = vld [vmem:[%s790_s6] sm:$0xff]  ;;  %vm50_vm5 = vcmask 0   ;;  %v642_v44 = vmov -inf   ;;  %s643_s23 = smov [#allocation7]  }
   0x9   :  { %559 = vmatmul.mubr.msk.f32.vlgmr.msra.gmra.mxu1 %vm56_vm2, %v134_v6  ;;  %562 = vmatpush3.msk.msra.mxu0 %vm60_vm0, %v135_v5  ;;  %v532_v14 = vld [vmem:[%s789_s5] ss:$0 sm:$0xff]  ;;  %v537_v37 = vld [vmem:[#allocation5] ss:$0 sm:$0xff]  ;;  %51 = vst.msk [vmem:[#allocation2] sm:$0x1] %vm50_vm5, %v640_v4 }
   0xa   :  { %563 = vmatprep.mubr.msk.f32.mxu0 %vm641_vm1, %v640_v4  ;;  %566 = vmatprep.subr.mxu1 %v302_v8  ;;  %v533_v25 = vld [vmem:[%s791_s7] ss:$0 sm:$0xff]  ;;  %53 = vst.msk [vmem:[#allocation4] sm:$0x1] %vm50_vm5, %v640_v4  ;;  %52 = vst.msk [vmem:[#allocation3] sm:$0x1] %vm50_vm5, %v642_v44 }
   0xb   :  { %564 = vmatmul.mubr.msk.f32.vlgmr.msra.gmra.mxu0 %vm56_vm2, %v212_v7  ;;  %567 = vmatpush3.msra.mxu1 %v302_v8  ;;  %v536_v32 = vld [vmem:[%s792_s8] ss:$0 sm:$0xff]  ;;  %v454_v61 = vshrl.u32 %v453_v59, 7  ;;  %s504_s24 = sshll.u32 %s643_s23, 4  ;;  %s505_s24 = int_to_ptr.vmem [resolvable:$true] %s504_s24 }
   0xc   :  { %568 = vmatprep.subr.mxu1 %v301_v9  ;;  %s596_s25 = scalar_lea.vmem %s505_s24, 16  ;;  %s600_s26 = scalar_lea.vmem %s505_s24, 32 }
   0xd   :  { %569 = vmatpush3.msra.mxu1 %v301_v9  ;;  %v455_v1 = vsub.s32 0, %v454_v61  ;;  %p597_p0 = scmp.ne.s32.totalorder %s505_s24, %s596_s25  ;;  %p601_p1 = scmp.lt.s32.totalorder %s505_s24, %s505_s24 }
   0xe   :  { %570 = vmatprep.subr.mxu1 %v300_v10  ;;  %p602_p2 = scmp.lt.s32.totalorder %s600_s26, %s596_s25 }
   0xf   :  { %571 = vmatpush3.msra.mxu1 %v300_v10 }
  0x10   :  { %572 = vmatprep.subr.mxu1 %v299_v11  ;;  %v418_v60 = vld [vmem:[#allocation2] sm:$0x1]  ;;  %p603_p3 = por %p602_p2, %p601_p1 }
  0x11   :  { %573 = vmatpush3.msra.mxu1 %v299_v11  ;;  %v434_v0 = vld [vmem:[#allocation3] sm:$0x1] }
  0x12   :  { %p604_p4 = pnand %p603_p3, %p597_p0 }
  0xc7   :  { %v130_v12 = vpop.f32.mrf.mxu0 }
  0xc9   :  { %v208_v13 = vpop.f32.mrf.mxu1  ;;  %v555_v15 = vpop.f32.mrf.mxu0 }
  0xca   :  { %v286_v16 = vadd.f32 %v208_v13, %v130_v12 }
  0xcb   :  { %v560_v17 = vpop.f32.mrf.mxu1  ;;  %v282_v18 = vpop.f32.mrf.mxu0 }
  0xcc   :  { %v295_v19 = vadd.f32 %v532_v14, %v286_v16  ;;  %v287_v20 = vadd.f32 %v282_v18, %v130_v12 }
  0xcd   :  { %v565_v21 = vpop.f32.mrf.mxu0 }
  0xce   :  { %v297_v22 = vmax.f32 %v295_v19, 0.0  ;;  %v296_v23 = vadd.f32 %v532_v14, %v287_v20  ;;  %v447_v19 = vld [vmem:[#allocation4] sm:$0x1] }
  0xd0   :  { %v298_v24 = vmax.f32 %v296_v23, 0.0  ;;  %574 = vmatprep.mubr.msk.f32.mxu1 %vm310_vm3, %v297_v22 }
  0xd2   :  { %575 = vmatmul.mubr.msk.f32.vlgmr.msra.gmra.mxu1 %vm310_vm3, %v298_v24 }
 0x192   :  { %v576_v26 = vpop.f32.mrf.mxu1 }
 0x193   :  { %v389_v27 = vadd.f32 %v576_v26, %v533_v25 }
 0x194   :  { %v383_v28 = vpop.f32.mrf.mxu1 }
 0x195   :  { %v384_v29 = vadd.f32 %v533_v25, %v383_v28  ;;  %v393_v30 = vmax.f32 %v389_v27, 0.0 }
 0x197   :  { %v392_v31 = vmax.f32 %v384_v29, 0.0  ;;  %v402_v35 = vmul.f32 %v536_v32, %v393_v30 }
 0x199   :  { %v401_v33 = vmul.f32 %v536_v32, %v392_v31  ;;  %v406_v36 = vsel %vm310_vm3, %v402_v35, 0.0 }
 0x19b   :  { %v403_v34 = vsel %vm310_vm3, %v401_v33, 0.0 }
 0x19c   :  { %404 = vadd.xlane.f32.xlu0 %v403_v34 }
 0x1a0   :  { %407 = vadd.xlane.f32.xlu0 %v406_v36 }
 0x225   :  { %v405_v38 = vpop.xlane.xlu0 %404 }
 0x226   :  { %v416_v39 = vadd.f32 %v537_v37, %v405_v38 }
 0x228   :  { %v420_v40 = vsel %vm419_vm4, %v416_v39, 0.0 }
 0x229   :  { %421 = vadd.xlane.f32.xlu1 %v420_v40  ;;  %v408_v41 = vpop.xlane.xlu0 %407 }
 0x22a   :  { %v417_v42 = vadd.f32 %v537_v37, %v408_v41 }
 0x22c   :  { %v435_v43 = vsel %vm419_vm4, %v417_v42, -inf }
 0x22d   :  { %436 = vmax.xlane.f32.xlu1 %v435_v43 }
 0x2b2   :  { %v422_v45 = vpop.xlane.xlu1 %421 }
 0x2b3   :  { %v423_v46 = vrot.slane %v422_v45, 4 }
 0x2b5   :  { %v424_v47 = vadd.f32 %v423_v46, %v422_v45 }
 0x2b6   :  { %v437_v48 = vpop.xlane.xlu1 %436 }
 0x2b7   :  { %v425_v49 = vrot.slane %v424_v47, 2  ;;  %v438_v50 = vrot.slane %v437_v48, 4 }
 0x2b9   :  { %v439_v51 = vmax.f32 %v437_v48, %v438_v50  ;;  %v426_v52 = vadd.f32 %v425_v49, %v424_v47 }
 0x2bb   :  { %v440_v53 = vrot.slane %v439_v51, 2  ;;  %v427_v54 = vrot.slane %v426_v52, 1 }
 0x2bd   :  { %v441_v55 = vmax.f32 %v439_v51, %v440_v53  ;;  %v428_v56 = vadd.f32 %v427_v54, %v426_v52 }
 0x2bf   :  { %577 = vpush %v428_v56  ;;  %v442_v57 = vrot.slane %v441_v55, 1 }
 0x2c1   :  { %v443_v58 = vmax.f32 %v441_v55, %v442_v57 }
 0x2c3   :  { %579 = vpush %v443_v58 }
 0x2f0   :  { %s578_s7 = spop %577 }
 0x2f1   :  { %v430_v62 = vstv %s578_s7 }
 0x2f2   :  { %v431_v63 = vadd.f32 %v430_v62, %v418_v60 }
 0x2f4   :  { %433 = vst.msk [vmem:[#allocation2] sm:$0x1] %vm50_vm5, %v431_v63  ;;  %s580_s8 = spop %579 }
 0x2f5   :  { %v445_v2 = vstv %s580_s8 }
 0x2f6   :  { %v446_v3 = vmax.f32 %v434_v0, %v445_v2 }
 0x2f8   :  { %v448_v4 = vsub.f32 %v434_v0, %v446_v3  ;;  %v456_v5 = vrot.slane %v446_v3, %v455_v1  ;;  %474 = vst.msk [vmem:[#allocation3] sm:$0x1] %vm50_vm5, %v446_v3 }
 0x2fa   :  { %v458_v6 = vsub.f32 %v417_v42, %v456_v5  ;;  %v449_v17 = vmul.f32 1.442695, %v448_v4 }
 0x2fb   :  { %v478_v24 = vld [vmem:[#allocation2] sm:$0x1] }
 0x2fc   :  { %v459_v7 = vmul.f32 1.442695, %v458_v6  ;;  %v479_v26 = vmul.f32 0.125, %v478_v24 }
 0x2fe   :  { %588 = vpow2.f32 %v459_v7  ;;  %v488_v31 = vsub.f32 0.0, %v479_v26 }
 0x2ff   :  { %590 = vpow2.f32 %v449_v17  ;;  %v480_v28 = vld [vmem:[#allocation3] sm:$0x1] }
 0x30b   :  { %v589_v8 = vpop.eup %588 }
 0x30c   :  { %v461_v9 = vsel %vm419_vm4, %v589_v8, 0.0  ;;  %v591_v18 = vpop.eup %590 }
 0x30d   :  { %462 = vadd.xlane.f32.xlu0 %v461_v9  ;;  %v451_v20 = vmul.f32 %v591_v18, %v447_v19 }
 0x396   :  { %v463_v10 = vpop.xlane.xlu0 %462 }
 0x397   :  { %v464_v11 = vrot.slane %v463_v10, 4 }
 0x399   :  { %v465_v12 = vadd.f32 %v464_v11, %v463_v10 }
 0x39b   :  { %v466_v13 = vrot.slane %v465_v12, 2 }
 0x39d   :  { %v467_v14 = vadd.f32 %v466_v13, %v465_v12 }
 0x39f   :  { %v468_v15 = vrot.slane %v467_v14, 1 }
 0x3a1   :  { %v469_v16 = vadd.f32 %v468_v15, %v467_v14 }
 0x3a3   :  { %581 = vpush %v469_v16 }
 0x3d4   :  { %s582_s22 = spop %581 }
 0x3d5   :  { %v471_v21 = vstv %s582_s22 }
 0x3d6   :  { %v472_v22 = vadd.f32 %v471_v21, %v451_v20 }
 0x3d8   :  { %473 = vst.msk [vmem:[#allocation4] sm:$0x1] %vm50_vm5, %v472_v22 }
 0x3df   :  { %v481_v23 = vld [vmem:[#allocation4] sm:$0x1] }
 0x3e0   :  { %592 = vlog2.f32 %v481_v23 }
 0x3ed   :  { %v593_v25 = vpop.eup %592 }
 0x3ee   :  { %v483_v27 = vmul.f32 0.6931472, %v593_v25 }
 0x3f0   :  { %v484_v29 = vadd.f32 %v483_v27, %v480_v28 }
 0x3f2   :  { %v538_v30 = vadd.f32 -2.0794415, %v484_v29 }
 0x3f4   :  { %v486_v32 = vmul.f32 1.442695, %v538_v30  ;;  %v489_v33 = vadd.f32 %v538_v30, %v488_v31 }
 0x3f6   :  { %594 = vpow2.f32 %v486_v32  ;;  %490 = vst.msk [vmem:[#allocation7] sm:$0x1] %vm50_vm5, %v489_v33 }
 0x3f7   :  { %607 = shalt.err (!%p604_p4)
}
 0x3f8   :  { %507 = dma.vmem_to_hbm [thread:$0]  %s505_s24, 16, %s794_s11, [#allocation8]   ;;  %v491_v34 = vld [vmem:[#allocation6] sm:$0x1] }
 0x3f9   :  { %v494_v35 = vmul.f32 0.99, %v491_v34  ;;  %s644_s9 = smov [#allocation9]   ;;  %vm492_vm6 = vcmp.eq.f32.partialorder %v491_v34, 0.0 }
 0x3fa   :  { %s514_s10 = sshll.u32 %s644_s9, 4  ;;  %s515_s10 = int_to_ptr.vmem [resolvable:$true] %s514_s10 }
 0x3fb   :  { %s616_s3 = scalar_lea.vmem %s515_s10, 16  ;;  %s620_s29 = scalar_lea.vmem %s515_s10, 32 }
 0x3fc   :  { %p617_p5 = scmp.ne.s32.totalorder %s515_s10, %s616_s3  ;;  %p621_p6 = scmp.lt.s32.totalorder %s515_s10, %s515_s10 }
 0x3fd   :  { %p622_p7 = scmp.lt.s32.totalorder %s620_s29, %s616_s3 }
 0x3ff   :  { %p623_p8 = por %p622_p7, %p621_p6 }
 0x401   :  { %p624_p9 = pnand %p623_p8, %p617_p5 }
 0x403   :  { %v595_v36 = vpop.eup %594 }
 0x404   :  { %v493_v37 = vmul.f32 0.01, %v595_v36 }
 0x406   :  { %v495_v38 = vadd.f32 %v494_v35, %v493_v37 }
 0x408   :  { %v496_v39 = vsel %vm492_vm6, %v595_v36, %v495_v38 }
 0x409   :  { %497 = vst.msk [vmem:[#allocation9] sm:$0x1] %vm50_vm5, %v496_v39 }
 0x40a   :  { %627 = shalt.err (!%p624_p9)
}
 0x40b   :  { %517 = dma.vmem_to_hbm [thread:$0]  %s515_s10, 16, %s795_s12, [#allocation10]  }
 0x40c   :  { %636 = dma.done.wait [#allocation8], 16  }
 0x40d   :  { %637 = vsyncadd [#allocation8], 4294967280 }
 0x40e   :  { %638 = dma.done.wait [#allocation10], 16  }
 0x40f   :  { %639 = vsyncadd [#allocation10], 4294967280 }
 0x410   :  { %524 = vsyncpa [#allocation8], 1 }
 0x411   :  { %525 = vsyncpa [#allocation10], 1 }

</bundles_post_ra>
